<compile_context>
chip_gen: v7x
topology: tpu7x:2x2x1
jax: 0.10.0
libtpu: 0.0.40
codegen_flags: <defaults>
</compile_context>

<pallas_src>
import functools

import jax
import jax.numpy as jnp
from jax.experimental import pallas as pl
from jax.experimental.pallas import tpu as pltpu

EPS = 1e-5
VMEM_LIMIT_BYTES = 32 * 1024 * 1024       # raise v5e's 16 MiB scoped default; safe on all gens
TILE_VMEM_BUDGET = 20 * 1024 * 1024       # budget for the pipelined per-step buffers


def _round_up(x, m):
    return (x + m - 1) // m * m


def _pick_tile_m(m_rows, k, oc, out_bytes):
    """Largest M tile (multiple of 16 sublanes for bf16) fitting the VMEM budget."""
    per_row = 2 * (k * 2) + 2 * (oc * out_bytes)   # double-buffered patches + output
    t = TILE_VMEM_BUDGET // max(per_row, 1)
    t = min(t, 8192)                               # per-step latency sanity cap
    if t >= 512:
        t = (t // 512) * 512
    else:
        t = max(16, (t // 16) * 16)
    return int(min(t, _round_up(m_rows, 16)))


def _stats_kernel(p_ref, w_ref, sum_ref, sq_ref):
    """Pass 1: conv matmul for one M tile + per-channel sum / sum-of-squares."""
    @pl.when(pl.program_id(1) == 0)
    def _():
        sum_ref[...] = jnp.zeros_like(sum_ref)
        sq_ref[...] = jnp.zeros_like(sq_ref)

    acc = jnp.dot(p_ref[...], w_ref[...], preferred_element_type=jnp.float32)  # MXU
    tm, oc = acc.shape
    # Cross-vreg VPU adds into an 8-sublane partial; no per-step XLU fold.
    acc3 = acc.reshape(tm // 8, 8, oc)
    sum_ref[...] += jnp.sum(acc3, axis=0, keepdims=True)
    sq_ref[...] += jnp.sum(acc3 * acc3, axis=0, keepdims=True)


def _apply_kernel(scale_ref, shift_ref, p_ref, w_ref, o_ref):
    """Pass 2: recompute conv matmul for one M tile, apply precomputed BN + ReLU."""
    acc = jnp.dot(p_ref[...], w_ref[...], preferred_element_type=jnp.float32)
    o_ref[...] = jnp.maximum(acc * scale_ref[...] + shift_ref[...], 0.0).astype(o_ref.dtype)


@functools.partial(jax.jit, static_argnames=("channels_last", "out_dtype"))
def down_conv(x, weight, gamma, beta, *, channels_last=False, out_dtype=jnp.float32):
    """x: (N,C,H,W) f32; weight: (OC,C,2,2); gamma/beta: (OC,).

    Default output matches PyTorch: (N, OC, H//2, W//2) float32.
    channels_last=True returns NHWC and skips the layout epilogue.
    """
    N, C, H, W = x.shape
    OC = weight.shape[0]
    OH, OW = H // 2, W // 2
    if H % 2 or W % 2:                      # PyTorch floors odd spatial dims
        x = x[:, :, : 2 * OH, : 2 * OW]
    M, K = N * OH * OW, C * 4
    out_bytes = jnp.dtype(out_dtype).itemsize

    tile_m = _pick_tile_m(M, K, OC, out_bytes)
    num_tiles = pl.cdiv(M, tile_m)
    nsplit = 2 if num_tiles >= 2 else 1     # shard the stats pass across v7x's 2 TCs
    num_tiles = _round_up(num_tiles, nsplit)
    tiles_per_split = num_tiles // nsplit
    M_pad = num_tiles * tile_m

    # space-to-depth (one fused XLA pass over x; bf16, NO K padding):
    #   (N,C,OH,2,OW,2) -> (N,OH,OW,C,2,2) -> (M, K)
    # TODO(synk): fuse this layout pass into the kernels' own DMA (read x directly
    # via 4 tap-strided accumulated matmuls) to drop the remaining extra HBM pass.
    patches = (x.reshape(N, C, OH, 2, OW, 2)
                 .transpose(0, 2, 4, 1, 3, 5)
                 .reshape(M, K)).astype(jnp.bfloat16)
    if M_pad != M:
        patches = jnp.pad(patches, ((0, M_pad - M), (0, 0)))   # zero rows: no effect on sums

    w2 = weight.reshape(OC, K).T.astype(jnp.bfloat16)           # (K, OC), matches patch order

    matmul_flops = 2 * M_pad * K * OC
    stream_bytes = M_pad * K * 2 + K * OC * 2

    # ---- pass 1: global per-channel sum / sum-of-squares of the conv output ----
    # TODO(synk): single-buffer the grid-invariant w2 block (pl.Buffered(1)) once
    # verified on all target toolchains; saves one K*OC*2-byte VMEM reservation.
    ch_sum, ch_sq = pl.pallas_call(
        _stats_kernel,
        out_shape=(jax.ShapeDtypeStruct((nsplit, 8, OC), jnp.float32),
                   jax.ShapeDtypeStruct((nsplit, 8, OC), jnp.float32)),
        grid=(nsplit, tiles_per_split),
        in_specs=[
            pl.BlockSpec((tile_m, K), lambda c, i: (c * tiles_per_split + i, 0)),
            pl.BlockSpec((K, OC), lambda c, i: (0, 0)),
        ],
        out_specs=[
            pl.BlockSpec((1, 8, OC), lambda c, i: (c, 0, 0)),
            pl.BlockSpec((1, 8, OC), lambda c, i: (c, 0, 0)),
        ],
        compiler_params=pltpu.CompilerParams(
            dimension_semantics=("parallel", "arbitrary"),
            vmem_limit_bytes=VMEM_LIMIT_BYTES),
        cost_estimate=pl.CostEstimate(
            flops=matmul_flops + 4 * M_pad * OC,
            transcendentals=0,
            bytes_accessed=stream_bytes + 2 * nsplit * 8 * OC * 4),
    )(patches, w2)

    # ---- BN prep hoisted out of the per-tile loop (tiny XLA ops) ----
    # TODO(synk): switch to Chan-style centered partial sums if E[x^2]-E[x]^2
    # cancellation becomes an issue at production M.
    mean = ch_sum.sum(axis=(0, 1)) / M
    ex2 = ch_sq.sum(axis=(0, 1)) / M
    var = jnp.maximum(ex2 - mean * mean, 0.0)                  # biased (training-mode) var
    inv = jax.lax.rsqrt(var + EPS)
    scale = (gamma.astype(jnp.float32) * inv).reshape(1, OC)
    shift = (beta.astype(jnp.float32) - mean * gamma.astype(jnp.float32) * inv).reshape(1, OC)

    # ---- pass 2: recompute conv tile, apply scale/shift + ReLU ----
    out_mat = pl.pallas_call(
        _apply_kernel,
        out_shape=jax.ShapeDtypeStruct((M_pad, OC), out_dtype),
        grid=(num_tiles,),
        in_specs=[
            pl.BlockSpec((1, OC), lambda i: (0, 0)),
            pl.BlockSpec((1, OC), lambda i: (0, 0)),
            pl.BlockSpec((tile_m, K), lambda i: (i, 0)),
            pl.BlockSpec((K, OC), lambda i: (0, 0)),
        ],
        out_specs=pl.BlockSpec((tile_m, OC), lambda i: (i, 0)),
        compiler_params=pltpu.CompilerParams(
            dimension_semantics=("parallel",),        # M tiles shard across v7x TCs
            vmem_limit_bytes=VMEM_LIMIT_BYTES),
        cost_estimate=pl.CostEstimate(
            flops=matmul_flops + 3 * M_pad * OC,
            transcendentals=0,
            bytes_accessed=stream_bytes + 2 * OC * 4 + M_pad * OC * out_bytes),
    )(scale, shift, patches, w2)

    out = out_mat[:M].reshape(N, OH, OW, OC)
    if channels_last:
        return out
    # PyTorch NCHW semantics (one layout pass; pass channels_last=True to skip it).
    return out.transpose(0, 3, 1, 2)


def reference(x, weight, gamma, beta):
    """Plain-JAX f32 reference: Conv2d(k=2,s=2,no bias) + training-mode BN + ReLU."""
    conv = jax.lax.conv_general_dilated(
        x, weight, window_strides=(2, 2), padding="VALID",
        dimension_numbers=("NCHW", "OIHW", "NCHW"))
    mean = conv.mean(axis=(0, 2, 3), keepdims=True)
    var = ((conv - mean) ** 2).mean(axis=(0, 2, 3), keepdims=True)
    y = (conv - mean) * jax.lax.rsqrt(var + EPS)
    y = y * gamma.reshape(1, -1, 1, 1) + beta.reshape(1, -1, 1, 1)
    return jnp.maximum(y, 0.0)


if __name__ == "__main__":
    key = jax.random.PRNGKey(0)
    kx, kw, kg, kb = jax.random.split(key, 4)

    N, C, H, W = 2, 4, 16, 16
    OC = 8

    x = jax.random.normal(kx, (N, C, H, W), dtype=jnp.float32)
    weight = jax.random.normal(kw, (OC, C, 2, 2), dtype=jnp.float32) * 0.1
    gamma = 1.0 + 0.1 * jax.random.normal(kg, (OC,), dtype=jnp.float32)
    beta = 0.1 * jax.random.normal(kb, (OC,), dtype=jnp.float32)

    out = down_conv(x, weight, gamma, beta)
    jax.block_until_ready(out)
    assert out.shape == (N, OC, H // 2, W // 2)
    assert out.dtype == jnp.float32

    ref = reference(x, weight, gamma, beta)
    err = float(jnp.max(jnp.abs(out - ref)))
    # bf16 MXU inputs (f32 accumulation) vs f32 reference -> loosened tolerance.
    assert jnp.allclose(out, ref, atol=3e-2, rtol=3e-2), f"max abs err {err}"

    # Fast-path variant: NHWC + bf16 output (skips the NCHW layout epilogue).
    out_fast = down_conv(x, weight, gamma, beta,
                         channels_last=True, out_dtype=jnp.bfloat16)
    jax.block_until_ready(out_fast)
    assert out_fast.shape == (N, H // 2, W // 2, OC)
    assert bool(jnp.all(jnp.isfinite(out_fast.astype(jnp.float32))))

    print("KERNEL_OK")
</pallas_src>

<mosaic_0001>
module attributes {stable_mosaic.version = 11 : i64} {
  func.func @_apply_kernel(%arg0: i32, %arg1: memref<1x8xf32, #tpu.memory_space<vmem>>, %arg2: memref<1x8xf32, #tpu.memory_space<vmem>>, %arg3: memref<128x16xbf16, #tpu.memory_space<vmem>>, %arg4: memref<16x8xbf16, #tpu.memory_space<vmem>>, %arg5: memref<128x8xf32, #tpu.memory_space<vmem>>) attributes {dimension_semantics = [#tpu.dimension_semantics<parallel>], iteration_bounds = array<i64: 1>, scalar_prefetch = 0 : i64, scratch_operands = 0 : i64, tpu.core_type = #tpu.core_type<tc>, window_params = [{pipeline_mode = #tpu.pipeline_mode<synchronous>, transform_indices = @transform_0, window_bounds = array<i64: 1, 8>}, {pipeline_mode = #tpu.pipeline_mode<synchronous>, transform_indices = @transform_1, window_bounds = array<i64: 1, 8>}, {transform_indices = @transform_2, window_bounds = array<i64: 128, 16>}, {pipeline_mode = #tpu.pipeline_mode<synchronous>, transform_indices = @transform_3, window_bounds = array<i64: 16, 8>}, {transform_indices = @transform_4, window_bounds = array<i64: 128, 8>}]} {
    %c0 = arith.constant 0 : index
    %c0_0 = arith.constant 0 : index
    %0 = vector.load %arg3[%c0, %c0_0] : memref<128x16xbf16, #tpu.memory_space<vmem>>, vector<128x16xbf16>
    %c0_1 = arith.constant 0 : index
    %c0_2 = arith.constant 0 : index
    %1 = vector.load %arg4[%c0_1, %c0_2] : memref<16x8xbf16, #tpu.memory_space<vmem>>, vector<16x8xbf16>
    %cst = arith.constant dense<0.000000e+00> : vector<128x8xf32>
    %2 = tpu.matmul %0, %1, %cst {dimension_numbers = #tpu.dot_dimension_numbers<[1], [0], [0], [1], [0, 0, 1, 1], [], []>} : vector<128x16xbf16>, vector<16x8xbf16>, vector<128x8xf32> -> vector<128x8xf32>
    %c0_3 = arith.constant 0 : index
    %c0_4 = arith.constant 0 : index
    %3 = vector.load %arg1[%c0_3, %c0_4] : memref<1x8xf32, #tpu.memory_space<vmem>>, vector<1x8xf32>
    %4 = vector.broadcast %3 : vector<1x8xf32> to vector<128x8xf32>
    %5 = arith.mulf %2, %4 : vector<128x8xf32>
    %c0_5 = arith.constant 0 : index
    %c0_6 = arith.constant 0 : index
    %6 = vector.load %arg2[%c0_5, %c0_6] : memref<1x8xf32, #tpu.memory_space<vmem>>, vector<1x8xf32>
    %7 = vector.broadcast %6 : vector<1x8xf32> to vector<128x8xf32>
    %8 = arith.addf %5, %7 : vector<128x8xf32>
    %cst_7 = arith.constant 0.000000e+00 : f32
    %9 = vector.broadcast %cst_7 : f32 to vector<128x8xf32>
    %10 = arith.maximumf %8, %9 : vector<128x8xf32>
    %c0_8 = arith.constant 0 : index
    %c0_9 = arith.constant 0 : index
    %11 = vector.load %arg5[%c0_8, %c0_9] : memref<128x8xf32, #tpu.memory_space<vmem>>, vector<128x8xf32>
    tpu.vector_store %arg5[%c0_8, %c0_9], %10 {strides = array<i32>} : memref<128x8xf32, #tpu.memory_space<vmem>>, vector<128x8xf32>,
    return
  }
  func.func @transform_0(%arg0: i32) -> (i32, i32) {
    %c0_i32 = arith.constant 0 : i32
    %c0_i32_0 = arith.constant 0 : i32
    %c0_i32_1 = arith.constant 0 : i32
    return %c0_i32, %c0_i32_0 : i32, i32
  }
  func.func @transform_1(%arg0: i32) -> (i32, i32) {
    %c0_i32 = arith.constant 0 : i32
    %c0_i32_0 = arith.constant 0 : i32
    %c0_i32_1 = arith.constant 0 : i32
    return %c0_i32, %c0_i32_0 : i32, i32
  }
  func.func @transform_2(%arg0: i32) -> (i32, i32) {
    %c0_i32 = arith.constant 0 : i32
    %c0_i32_0 = arith.constant 0 : i32
    return %arg0, %c0_i32 : i32, i32
  }
  func.func @transform_3(%arg0: i32) -> (i32, i32) {
    %c0_i32 = arith.constant 0 : i32
    %c0_i32_0 = arith.constant 0 : i32
    %c0_i32_1 = arith.constant 0 : i32
    return %c0_i32, %c0_i32_0 : i32, i32
  }
  func.func @transform_4(%arg0: i32) -> (i32, i32) {
    %c0_i32 = arith.constant 0 : i32
    %c0_i32_0 = arith.constant 0 : i32
    return %arg0, %c0_i32 : i32, i32
  }
}

module attributes {stable_mosaic.version = 11 : i64} {
  func.func @_stats_kernel(%arg0: i32, %arg1: i32, %arg2: memref<128x16xbf16, #tpu.memory_space<vmem>>, %arg3: memref<16x8xbf16, #tpu.memory_space<vmem>>, %arg4: memref<1x8x8xf32, #tpu.memory_space<vmem>>, %arg5: memref<1x8x8xf32, #tpu.memory_space<vmem>>) attributes {dimension_semantics = [#tpu.dimension_semantics<parallel>, #tpu.dimension_semantics<arbitrary>], iteration_bounds = array<i64: 1, 1>, scalar_prefetch = 0 : i64, scratch_operands = 0 : i64, tpu.core_type = #tpu.core_type<tc>, window_params = [{transform_indices = @transform_0, window_bounds = array<i64: 128, 16>}, {pipeline_mode = #tpu.pipeline_mode<synchronous>, transform_indices = @transform_1, window_bounds = array<i64: 16, 8>}, {transform_indices = @transform_2, window_bounds = array<i64: 1, 8, 8>}, {transform_indices = @transform_3, window_bounds = array<i64: 1, 8, 8>}]} {
    %c0_i32 = arith.constant 0 : i32
    %0 = arith.cmpi eq, %arg1, %c0_i32 : i32
    %1 = arith.extui %0 : i1 to i32
    %c0_i32_0 = arith.constant 0 : i32
    %2 = arith.cmpi ne, %1, %c0_i32_0 : i32
    scf.if %2 {
      %cst_18 = arith.constant 0.000000e+00 : f32
      %18 = vector.broadcast %cst_18 : f32 to vector<1x8x8xf32>
      %c0_19 = arith.constant 0 : index
      %c0_20 = arith.constant 0 : index
      %c0_21 = arith.constant 0 : index
      %19 = vector.load %arg4[%c0_19, %c0_20, %c0_21] : memref<1x8x8xf32, #tpu.memory_space<vmem>>, vector<1x8x8xf32>
      tpu.vector_store %arg4[%c0_19, %c0_20, %c0_21], %18 {strides = array<i32>} : memref<1x8x8xf32, #tpu.memory_space<vmem>>, vector<1x8x8xf32>,
      %cst_22 = arith.constant 0.000000e+00 : f32
      %20 = vector.broadcast %cst_22 : f32 to vector<1x8x8xf32>
      %c0_23 = arith.constant 0 : index
      %c0_24 = arith.constant 0 : index
      %c0_25 = arith.constant 0 : index
      %21 = vector.load %arg5[%c0_23, %c0_24, %c0_25] : memref<1x8x8xf32, #tpu.memory_space<vmem>>, vector<1x8x8xf32>
      tpu.vector_store %arg5[%c0_23, %c0_24, %c0_25], %20 {strides = array<i32>} : memref<1x8x8xf32, #tpu.memory_space<vmem>>, vector<1x8x8xf32>,
    } else {
    }
    %c0 = arith.constant 0 : index
    %c0_1 = arith.constant 0 : index
    %3 = vector.load %arg2[%c0, %c0_1] : memref<128x16xbf16, #tpu.memory_space<vmem>>, vector<128x16xbf16>
    %c0_2 = arith.constant 0 : index
    %c0_3 = arith.constant 0 : index
    %4 = vector.load %arg3[%c0_2, %c0_3] : memref<16x8xbf16, #tpu.memory_space<vmem>>, vector<16x8xbf16>
    %cst = arith.constant dense<0.000000e+00> : vector<128x8xf32>
    %5 = tpu.matmul %3, %4, %cst {dimension_numbers = #tpu.dot_dimension_numbers<[1], [0], [0], [1], [0, 0, 1, 1], [], []>} : vector<128x16xbf16>, vector<16x8xbf16>, vector<128x8xf32> -> vector<128x8xf32>
    %6 = vector.shape_cast %5 : vector<128x8xf32> to vector<16x8x8xf32>
    %c0_4 = arith.constant 0 : index
    %c0_5 = arith.constant 0 : index
    %c0_6 = arith.constant 0 : index
    %7 = vector.load %arg4[%c0_4, %c0_5, %c0_6] : memref<1x8x8xf32, #tpu.memory_space<vmem>>, vector<1x8x8xf32>
    %cst_7 = arith.constant dense<0.000000e+00> : vector<8x8xf32>
    %8 = vector.multi_reduction <add>, %6, %cst_7 [0] : vector<16x8x8xf32> to vector<8x8xf32>
    %9 = vector.shape_cast %8 : vector<8x8xf32> to vector<1x8x8xf32>
    %10 = arith.addf %7, %9 : vector<1x8x8xf32>
    %c0_8 = arith.constant 0 : index
    %c0_9 = arith.constant 0 : index
    %c0_10 = arith.constant 0 : index
    %11 = vector.load %arg4[%c0_8, %c0_9, %c0_10] : memref<1x8x8xf32, #tpu.memory_space<vmem>>, vector<1x8x8xf32>
    tpu.vector_store %arg4[%c0_8, %c0_9, %c0_10], %10 {strides = array<i32>} : memref<1x8x8xf32, #tpu.memory_space<vmem>>, vector<1x8x8xf32>,
    %c0_11 = arith.constant 0 : index
    %c0_12 = arith.constant 0 : index
    %c0_13 = arith.constant 0 : index
    %12 = vector.load %arg5[%c0_11, %c0_12, %c0_13] : memref<1x8x8xf32, #tpu.memory_space<vmem>>, vector<1x8x8xf32>
    %13 = arith.mulf %6, %6 : vector<16x8x8xf32>
    %cst_14 = arith.constant dense<0.000000e+00> : vector<8x8xf32>
    %14 = vector.multi_reduction <add>, %13, %cst_14 [0] : vector<16x8x8xf32> to vector<8x8xf32>
    %15 = vector.shape_cast %14 : vector<8x8xf32> to vector<1x8x8xf32>
    %16 = arith.addf %12, %15 : vector<1x8x8xf32>
    %c0_15 = arith.constant 0 : index
    %c0_16 = arith.constant 0 : index
    %c0_17 = arith.constant 0 : index
    %17 = vector.load %arg5[%c0_15, %c0_16, %c0_17] : memref<1x8x8xf32, #tpu.memory_space<vmem>>, vector<1x8x8xf32>
    tpu.vector_store %arg5[%c0_15, %c0_16, %c0_17], %16 {strides = array<i32>} : memref<1x8x8xf32, #tpu.memory_space<vmem>>, vector<1x8x8xf32>,
    return
  }
  func.func @transform_0(%arg0: i32, %arg1: i32) -> (i32, i32) {
    %c1_i32 = arith.constant 1 : i32
    %0 = arith.muli %arg0, %c1_i32 : i32
    %1 = arith.addi %0, %arg1 : i32
    %c0_i32 = arith.constant 0 : i32
    %c0_i32_0 = arith.constant 0 : i32
    return %1, %c0_i32 : i32, i32
  }
  func.func @transform_1(%arg0: i32, %arg1: i32) -> (i32, i32) {
    %c0_i32 = arith.constant 0 : i32
    %c0_i32_0 = arith.constant 0 : i32
    %c0_i32_1 = arith.constant 0 : i32
    return %c0_i32, %c0_i32_0 : i32, i32
  }
  func.func @transform_2(%arg0: i32, %arg1: i32) -> (i32, i32, i32) {
    %c0_i32 = arith.constant 0 : i32
    %c0_i32_0 = arith.constant 0 : i32
    %c0_i32_1 = arith.constant 0 : i32
    return %arg0, %c0_i32, %c0_i32_0 : i32, i32, i32
  }
  func.func @transform_3(%arg0: i32, %arg1: i32) -> (i32, i32, i32) {
    %c0_i32 = arith.constant 0 : i32
    %c0_i32_0 = arith.constant 0 : i32
    %c0_i32_1 = arith.constant 0 : i32
    return %arg0, %c0_i32, %c0_i32_0 : i32, i32, i32
  }
}

</mosaic_0001>

<bundles_post_ra>
// kernel: down_conv.2
= control target key start
LH: loop header
LB: loop body
LE: loop exit
PB: predicated region body
PF: predicated region fallthrough
CT: control target
= control target key end

     0   :  { %vm107_vm0 = vcmask 130048   ;;  %vm40_vm1 = vcmask 64512   ;;  %v384_v9 = vmov 0.0   ;;  %s494_s1 = inlined_call_operand.vmem [shape: bf16[16,8], index: 1, kind: input, shape index: {}]   ;;  %s495_s0 = inlined_call_operand.vmem [shape: bf16[128,16], index: 0, kind: input, shape index: {}]   ;;  %s496_s2 = inlined_call_operand.vmem [shape: f32[1,8,8], index: 2, kind: output, shape index: {0}]   ;;  %s497_s3 = inlined_call_operand.vmem [shape: f32[1,8,8], index: 3, kind: output, shape index: {1}]  }
   0x1   :  { %v375_v0 = vld [vmem:[%s494_s1] sm:$0xff]   ;;  %v377_v2 = vld [vmem:[%s495_s0 + $0x8] sm:$0xff]   ;;  %v378_v3 = vld [vmem:[%s495_s0 + $0x10] sm:$0xff]   ;;  %41 = vst.msk [vmem:[%s496_s2] sm:$0xff] %vm40_vm1, %v384_v9 }
   0x2   :  { %v376_v1 = vld [vmem:[%s495_s0] sm:$0xff]   ;;  %354 = vmatprep.subr.bf16.mxu0 %v375_v0  ;;  %372 = vmatprep.subr.bf16.mxu1 %v375_v0  ;;  %v381_v5 = vld [vmem:[%s495_s0 + $0x28] sm:$0xff]   ;;  %v382_v6 = vld [vmem:[%s495_s0 + $0x30] sm:$0xff]   ;;  %42 = vst.msk [vmem:[%s497_s3] sm:$0xff] %vm40_vm1, %v384_v9 }
   0x3   :  { %355 = vmatpush3.bf16.msra.mxu0 %v375_v0  ;;  %356 = vmatprep.mubr.msk.bf16.mxu0 %vm107_vm0, %v376_v1  ;;  %v380_v4 = vld [vmem:[%s495_s0 + $0x20] sm:$0xff]   ;;  %v379_v7 = vld [vmem:[%s495_s0 + $0x18] sm:$0xff]  }
   0x4   :  { %373 = vmatpush3.bf16.msra.mxu1 %v375_v0  ;;  %364 = vmatprep.mubr.msk.bf16.mxu1 %vm107_vm0, %v380_v4  ;;  %v383_v8 = vld [vmem:[%s495_s0 + $0x38] sm:$0xff]  }
   0x6   :  { %357 = vmatmul.mubr.msk.bf16.vlgmr.msra.gmra.mrb[0].mxu0 %vm107_vm0, %v377_v2 }
   0x7   :  { %360 = vmatprep.mubr.msk.bf16.mxu0 %vm107_vm0, %v378_v3  ;;  %365 = vmatmul.mubr.msk.bf16.vlgmr.msra.gmra.mrb[0].mxu1 %vm107_vm0, %v381_v5 }
   0x8   :  { %368 = vmatprep.mubr.msk.bf16.mxu1 %vm107_vm0, %v382_v6 }
   0xe   :  { %361 = vmatmul.mubr.msk.bf16.gmra.mrb[4].mxu0 %vm107_vm0, %v379_v7 }
   0xf   :  { %369 = vmatmul.mubr.msk.bf16.gmra.mrb[4].mxu1 %vm107_vm0, %v383_v8 }
  0xd9   :  { %v358_v10 = vpop.f32.mrb[0].mxu0 }
  0xda   :  { %v166_v11 = vpop.f32.mrb[1].mxu0  ;;  %v366_v14 = vpop.f32.mrb[0].mxu1  ;;  %v267_v17 = vmul.f32 %v358_v10, %v358_v10  ;;  %v234_v24 = vsel %vm40_vm1, %v358_v10, 0.0 }
  0xdb   :  { %v265_v12 = vmul.f32 %v166_v11, %v166_v11  ;;  %v359_v13 = vpop.f32.mrb[2].mxu0  ;;  %v198_v16 = vpop.f32.mrb[1].mxu1  ;;  %v231_v18 = vsel %vm40_vm1, %v166_v11, 0.0  ;;  %v275_v5 = vmul.f32 %v366_v14, %v366_v14  ;;  %v250_v9 = vsel %vm40_vm1, %v366_v14, 0.0 }
  0xdc   :  { %v169_v15 = vpop.f32.mrb[3].mxu0  ;;  %v367_v21 = vpop.f32.mrb[2].mxu1  ;;  %v268_v26 = vmul.f32 %v359_v13, %v359_v13  ;;  %v284_v30 = vsel %vm40_vm1, %v267_v17, 0.0  ;;  %v236_v31 = vsel %vm40_vm1, %v359_v13, 0.0  ;;  %v273_v56 = vmul.f32 %v198_v16, %v198_v16 }
  0xdd   :  { %v232_v19 = vsel %vm40_vm1, %v169_v15, 0.0  ;;  %v266_v20 = vmul.f32 %v169_v15, %v169_v15  ;;  %v201_v23 = vpop.f32.mrb[3].mxu1  ;;  %v281_v25 = vsel %vm40_vm1, %v265_v12, 0.0  ;;  %v246_v61 = vsel %vm40_vm1, %v198_v16, 0.0 }
  0xde   :  { %v233_v22 = vadd.f32 %v232_v19, %v231_v18  ;;  %v286_v36 = vsel %vm40_vm1, %v268_v26, 0.0  ;;  %v296_v1 = vsel %vm40_vm1, %v273_v56, 0.0  ;;  %v274_v2 = vmul.f32 %v201_v23, %v201_v23 }
  0xdf   :  { %v282_v27 = vsel %vm40_vm1, %v266_v20, 0.0  ;;  %v248_v6 = vsel %vm40_vm1, %v201_v23, 0.0  ;;  %v276_v10 = vmul.f32 %v367_v21, %v367_v21  ;;  %v300_v16 = vsel %vm40_vm1, %v275_v5, 0.0 }
  0xe0   :  { %v235_v28 = vadd.f32 %v234_v24, %v233_v22  ;;  %v283_v29 = vadd.f32 %v282_v27, %v281_v25  ;;  %v298_v11 = vsel %vm40_vm1, %v274_v2, 0.0  ;;  %v252_v17 = vsel %vm40_vm1, %v367_v21, 0.0 }
  0xe1   :  { %v362_v32 = vpop.f32.mrb[4].mxu0  ;;  %v302_v22 = vsel %vm40_vm1, %v276_v10, 0.0 }
  0xe2   :  { %v285_v33 = vadd.f32 %v284_v30, %v283_v29  ;;  %v182_v34 = vpop.f32.mrb[5].mxu0  ;;  %v237_v35 = vadd.f32 %v236_v31, %v235_v28  ;;  %v370_v40 = vpop.f32.mrb[4].mxu1  ;;  %v271_v45 = vmul.f32 %v362_v32, %v362_v32  ;;  %v242_v53 = vsel %vm40_vm1, %v362_v32, 0.0 }
  0xe3   :  { %v238_v37 = vsel %vm40_vm1, %v182_v34, 0.0  ;;  %v269_v38 = vmul.f32 %v182_v34, %v182_v34  ;;  %v363_v39 = vpop.f32.mrb[6].mxu0  ;;  %v214_v44 = vpop.f32.mrb[5].mxu1  ;;  %v279_v26 = vmul.f32 %v370_v40, %v370_v40  ;;  %v258_v30 = vsel %vm40_vm1, %v370_v40, 0.0  ;;  %v264_v40 = vld [vmem:[%s497_s3] sm:$0xff] }
  0xe4   :  { %v239_v41 = vadd.f32 %v238_v37, %v237_v35  ;;  %v287_v42 = vadd.f32 %v286_v36, %v285_v33  ;;  %v185_v43 = vpop.f32.mrb[7].mxu0  ;;  %v371_v49 = vpop.f32.mrb[6].mxu1  ;;  %v272_v54 = vmul.f32 %v363_v39, %v363_v39  ;;  %v292_v59 = vsel %vm40_vm1, %v271_v45, 0.0  ;;  %v229_v36 = vld [vmem:[%s496_s2] sm:$0xff] }
  0xe5   :  { %v288_v46 = vsel %vm40_vm1, %v269_v38, 0.0  ;;  %v240_v47 = vsel %vm40_vm1, %v185_v43, 0.0  ;;  %v270_v48 = vmul.f32 %v185_v43, %v185_v43  ;;  %v217_v52 = vpop.f32.mrb[7].mxu1  ;;  %v244_v60 = vsel %vm40_vm1, %v363_v39, 0.0 }
  0xe6   :  { %v289_v50 = vadd.f32 %v288_v46, %v287_v42  ;;  %v241_v51 = vadd.f32 %v240_v47, %v239_v41  ;;  %v294_v0 = vsel %vm40_vm1, %v272_v54, 0.0  ;;  %v277_v12 = vmul.f32 %v214_v44, %v214_v44 }
  0xe7   :  { %v290_v55 = vsel %vm40_vm1, %v270_v48, 0.0  ;;  %v254_v18 = vsel %vm40_vm1, %v214_v44, 0.0  ;;  %v278_v24 = vmul.f32 %v217_v52, %v217_v52  ;;  %v256_v27 = vsel %vm40_vm1, %v217_v52, 0.0 }
  0xe8   :  { %v243_v57 = vadd.f32 %v242_v53, %v241_v51  ;;  %v291_v58 = vadd.f32 %v290_v55, %v289_v50  ;;  %v304_v23 = vsel %vm40_vm1, %v277_v12, 0.0  ;;  %v280_v31 = vmul.f32 %v371_v49, %v371_v49 }
  0xe9   :  { %v306_v21 = vsel %vm40_vm1, %v278_v24, 0.0  ;;  %v308_v34 = vsel %vm40_vm1, %v279_v26, 0.0  ;;  %v260_v35 = vsel %vm40_vm1, %v371_v49, 0.0 }
  0xea   :  { %v293_v62 = vadd.f32 %v292_v59, %v291_v58  ;;  %v245_v63 = vadd.f32 %v244_v60, %v243_v57  ;;  %v310_v39 = vsel %vm40_vm1, %v280_v31, 0.0 }
  0xec   :  { %v247_v3 = vadd.f32 %v246_v61, %v245_v63  ;;  %v295_v4 = vadd.f32 %v294_v0, %v293_v62 }
  0xee   :  { %v297_v7 = vadd.f32 %v296_v1, %v295_v4  ;;  %v249_v8 = vadd.f32 %v248_v6, %v247_v3 }
  0xf0   :  { %v251_v13 = vadd.f32 %v250_v9, %v249_v8  ;;  %v299_v15 = vadd.f32 %v298_v11, %v297_v7 }
  0xf2   :  { %v301_v19 = vadd.f32 %v300_v16, %v299_v15  ;;  %v253_v20 = vadd.f32 %v252_v17, %v251_v13 }
  0xf4   :  { %v255_v14 = vadd.f32 %v254_v18, %v253_v20  ;;  %v303_v25 = vadd.f32 %v302_v22, %v301_v19 }
  0xf6   :  { %v305_v28 = vadd.f32 %v304_v23, %v303_v25  ;;  %v257_v29 = vadd.f32 %v256_v27, %v255_v14 }
  0xf8   :  { %v259_v32 = vadd.f32 %v258_v30, %v257_v29  ;;  %v307_v33 = vadd.f32 %v306_v21, %v305_v28 }
  0xfa   :  { %v261_v37 = vadd.f32 %v260_v35, %v259_v32  ;;  %v309_v38 = vadd.f32 %v308_v34, %v307_v33 }
  0xfc   :  { %v262_v41 = vadd.f32 %v261_v37, %v229_v36  ;;  %v311_v42 = vadd.f32 %v310_v39, %v309_v38 }
  0xfe   :  { %263 = vst.msk [vmem:[%s496_s2] sm:$0xff] %vm40_vm1, %v262_v41  ;;  %v312_v43 = vadd.f32 %v311_v42, %v264_v40 }
 0x100   :  { %313 = vst.msk [vmem:[%s497_s3] sm:$0xff] %vm40_vm1, %v312_v43 }

// kernel: down_conv.3
= control target key start
LH: loop header
LB: loop body
LE: loop exit
PB: predicated region body
PF: predicated region fallthrough
CT: control target
= control target key end

     0   :  { %vm82_vm0 = vcmask 130048   ;;  %vm266_vm1 = vcmask 64512   ;;  %s510_s3 = inlined_call_operand.vmem [shape: bf16[16,8], index: 3, kind: input, shape index: {}]   ;;  %s511_s2 = inlined_call_operand.vmem [shape: bf16[128,16], index: 2, kind: input, shape index: {}]   ;;  %s512_s0 = inlined_call_operand.vmem [shape: f32[1,8], index: 0, kind: input, shape index: {}]   ;;  %s513_s1 = inlined_call_operand.vmem [shape: f32[1,8], index: 1, kind: input, shape index: {}]   ;;  %s514_s4 = inlined_call_operand.vmem [shape: f32[128,8], index: 4, kind: output, shape index: {}]  }
   0x1   :  { %v335_v0 = vld [vmem:[%s510_s3] sm:$0xff]   ;;  %v338_v3 = vld [vmem:[%s511_s2 + $0x8] sm:$0xff]   ;;  %v340_v5 = vld [vmem:[%s511_s2 + $0x10] sm:$0xff]  }
   0x2   :  { %v336_v1 = vld [vmem:[%s511_s2] sm:$0xff]   ;;  %315 = vmatprep.subr.bf16.mxu0 %v335_v0  ;;  %333 = vmatprep.subr.bf16.mxu1 %v335_v0  ;;  %v339_v4 = vld [vmem:[%s511_s2 + $0x28] sm:$0xff]   ;;  %v341_v6 = vld [vmem:[%s511_s2 + $0x30] sm:$0xff]  }
   0x3   :  { %v337_v2 = vld [vmem:[%s511_s2 + $0x20] sm:$0xff]   ;;  %316 = vmatpush3.bf16.msra.mxu0 %v335_v0  ;;  %334 = vmatpush3.bf16.msra.mxu1 %v335_v0  ;;  %v342_v7 = vld [vmem:[%s511_s2 + $0x18] sm:$0xff]  }
   0x4   :  { %317 = vmatprep.mubr.msk.bf16.mxu0 %vm82_vm0, %v336_v1  ;;  %325 = vmatprep.mubr.msk.bf16.mxu1 %vm82_vm0, %v337_v2  ;;  %v343_v8 = vld [vmem:[%s511_s2 + $0x38] sm:$0xff]   ;;  %v407_v9 = vld [vmem:[%s512_s0] ss:$0 sm:$0xff] }
   0x5   :  { %v412_v11 = vld [vmem:[%s513_s1] ss:$0 sm:$0xff] }
   0x6   :  { %318 = vmatmul.mubr.msk.bf16.vlgmr.msra.gmra.mrb[0].mxu0 %vm82_vm0, %v338_v3  ;;  %326 = vmatmul.mubr.msk.bf16.vlgmr.msra.gmra.mrb[0].mxu1 %vm82_vm0, %v339_v4 }
   0x7   :  { %321 = vmatprep.mubr.msk.bf16.mxu0 %vm82_vm0, %v340_v5  ;;  %329 = vmatprep.mubr.msk.bf16.mxu1 %vm82_vm0, %v341_v6 }
   0xe   :  { %322 = vmatmul.mubr.msk.bf16.gmra.mrb[4].mxu0 %vm82_vm0, %v342_v7  ;;  %330 = vmatmul.mubr.msk.bf16.gmra.mrb[4].mxu1 %vm82_vm0, %v343_v8 }
  0xd9   :  { %v319_v10 = vpop.f32.mrb[0].mxu0  ;;  %v327_v12 = vpop.f32.mrb[0].mxu1 }
  0xda   :  { %v213_v13 = vmul.f32 %v319_v10, %v407_v9  ;;  %v221_v14 = vmul.f32 %v327_v12, %v407_v9  ;;  %v141_v15 = vpop.f32.mrb[1].mxu0  ;;  %v173_v16 = vpop.f32.mrb[1].mxu1 }
  0xdb   :  { %v211_v17 = vmul.f32 %v407_v9, %v141_v15  ;;  %v219_v18 = vmul.f32 %v407_v9, %v173_v16  ;;  %v320_v19 = vpop.f32.mrb[2].mxu0  ;;  %v328_v20 = vpop.f32.mrb[2].mxu1 }
  0xdc   :  { %v236_v21 = vadd.f32 %v412_v11, %v213_v13  ;;  %v244_v22 = vadd.f32 %v412_v11, %v221_v14  ;;  %v214_v23 = vmul.f32 %v320_v19, %v407_v9  ;;  %v222_v24 = vmul.f32 %v328_v20, %v407_v9  ;;  %v144_v25 = vpop.f32.mrb[3].mxu0  ;;  %v176_v26 = vpop.f32.mrb[3].mxu1 }
  0xdd   :  { %v234_v27 = vadd.f32 %v412_v11, %v211_v17  ;;  %v242_v28 = vadd.f32 %v412_v11, %v219_v18  ;;  %v212_v29 = vmul.f32 %v407_v9, %v144_v25  ;;  %v220_v30 = vmul.f32 %v407_v9, %v176_v26 }
  0xde   :  { %v252_v31 = vmax.f32 %v236_v21, 0.0  ;;  %v260_v32 = vmax.f32 %v244_v22, 0.0  ;;  %v237_v33 = vadd.f32 %v412_v11, %v214_v23  ;;  %v245_v34 = vadd.f32 %v412_v11, %v222_v24 }
  0xdf   :  { %v250_v35 = vmax.f32 %v234_v27, 0.0  ;;  %v258_v36 = vmax.f32 %v242_v28, 0.0  ;;  %v235_v37 = vadd.f32 %v412_v11, %v212_v29  ;;  %v243_v38 = vadd.f32 %v412_v11, %v220_v30 }
  0xe0   :  { %269 = vst.msk [vmem:[%s514_s4 + $0x10] sm:$0xff] %vm266_vm1, %v252_v31  ;;  %277 = vst.msk [vmem:[%s514_s4 + $0x50] sm:$0xff] %vm266_vm1, %v260_v32  ;;  %v253_v39 = vmax.f32 %v237_v33, 0.0  ;;  %v261_v40 = vmax.f32 %v245_v34, 0.0 }
  0xe1   :  { %267 = vst.msk [vmem:[%s514_s4] sm:$0xff] %vm266_vm1, %v250_v35  ;;  %275 = vst.msk [vmem:[%s514_s4 + $0x40] sm:$0xff] %vm266_vm1, %v258_v36  ;;  %v251_v41 = vmax.f32 %v235_v37, 0.0  ;;  %v259_v42 = vmax.f32 %v243_v38, 0.0  ;;  %v323_v43 = vpop.f32.mrb[4].mxu0  ;;  %v331_v44 = vpop.f32.mrb[4].mxu1 }
  0xe2   :  { %270 = vst.msk [vmem:[%s514_s4 + $0x18] sm:$0xff] %vm266_vm1, %v253_v39  ;;  %278 = vst.msk [vmem:[%s514_s4 + $0x58] sm:$0xff] %vm266_vm1, %v261_v40  ;;  %v217_v45 = vmul.f32 %v323_v43, %v407_v9  ;;  %v225_v46 = vmul.f32 %v331_v44, %v407_v9  ;;  %v157_v47 = vpop.f32.mrb[5].mxu0  ;;  %v189_v48 = vpop.f32.mrb[5].mxu1 }
  0xe3   :  { %268 = vst.msk [vmem:[%s514_s4 + $0x8] sm:$0xff] %vm266_vm1, %v251_v41  ;;  %276 = vst.msk [vmem:[%s514_s4 + $0x48] sm:$0xff] %vm266_vm1, %v259_v42  ;;  %v215_v49 = vmul.f32 %v407_v9, %v157_v47  ;;  %v223_v50 = vmul.f32 %v407_v9, %v189_v48  ;;  %v324_v51 = vpop.f32.mrb[6].mxu0  ;;  %v332_v52 = vpop.f32.mrb[6].mxu1 }
  0xe4   :  { %v240_v53 = vadd.f32 %v412_v11, %v217_v45  ;;  %v248_v54 = vadd.f32 %v412_v11, %v225_v46  ;;  %v218_v55 = vmul.f32 %v324_v51, %v407_v9  ;;  %v226_v56 = vmul.f32 %v332_v52, %v407_v9  ;;  %v160_v57 = vpop.f32.mrb[7].mxu0  ;;  %v192_v58 = vpop.f32.mrb[7].mxu1 }
  0xe5   :  { %v238_v59 = vadd.f32 %v412_v11, %v215_v49  ;;  %v246_v60 = vadd.f32 %v412_v11, %v223_v50  ;;  %v216_v61 = vmul.f32 %v407_v9, %v160_v57  ;;  %v224_v62 = vmul.f32 %v407_v9, %v192_v58 }
  0xe6   :  { %v256_v63 = vmax.f32 %v240_v53, 0.0  ;;  %v264_v0 = vmax.f32 %v248_v54, 0.0  ;;  %v241_v1 = vadd.f32 %v412_v11, %v218_v55  ;;  %v249_v2 = vadd.f32 %v412_v11, %v226_v56 }
  0xe7   :  { %v254_v3 = vmax.f32 %v238_v59, 0.0  ;;  %v262_v4 = vmax.f32 %v246_v60, 0.0  ;;  %v239_v5 = vadd.f32 %v412_v11, %v216_v61  ;;  %v247_v6 = vadd.f32 %v412_v11, %v224_v62 }
  0xe8   :  { %273 = vst.msk [vmem:[%s514_s4 + $0x30] sm:$0xff] %vm266_vm1, %v256_v63  ;;  %281 = vst.msk [vmem:[%s514_s4 + $0x70] sm:$0xff] %vm266_vm1, %v264_v0  ;;  %v257_v7 = vmax.f32 %v241_v1, 0.0  ;;  %v265_v8 = vmax.f32 %v249_v2, 0.0 }
  0xe9   :  { %271 = vst.msk [vmem:[%s514_s4 + $0x20] sm:$0xff] %vm266_vm1, %v254_v3  ;;  %279 = vst.msk [vmem:[%s514_s4 + $0x60] sm:$0xff] %vm266_vm1, %v262_v4  ;;  %v255_v9 = vmax.f32 %v239_v5, 0.0  ;;  %v263_v10 = vmax.f32 %v247_v6, 0.0 }
  0xea   :  { %274 = vst.msk [vmem:[%s514_s4 + $0x38] sm:$0xff] %vm266_vm1, %v257_v7  ;;  %282 = vst.msk [vmem:[%s514_s4 + $0x78] sm:$0xff] %vm266_vm1, %v265_v8 }
  0xeb   :  { %272 = vst.msk [vmem:[%s514_s4 + $0x28] sm:$0xff] %vm266_vm1, %v255_v9  ;;  %280 = vst.msk [vmem:[%s514_s4 + $0x68] sm:$0xff] %vm266_vm1, %v263_v10 }

</bundles_post_ra>
